<compile_context>
chip_gen: v6e
topology: v6e:2x2x1
jax: 0.10.0
libtpu: 0.0.40
codegen_flags: <defaults>
</compile_context>

<pallas_src>
import functools

import jax
import jax.numpy as jnp
from jax.experimental import pallas as pl
from jax.experimental.pallas import tpu as pltpu


def _leaky_relu(x, slope=0.01):  # PyTorch F.leaky_relu default slope
    return jnp.where(x >= 0, x, slope * x)


def _mlp_logprob_kernel(samples_ref, table_t_ref, const_col_ref, out_ref, *, alpha):
    """Per-tile body.

    samples_ref  : (2, TB) int32   -- node-major, batch on lanes
    table_t_ref  : (K, K) float32  -- transposed dep-node table: table_t[c, r] = table[r, c]
    const_col_ref: (K, 1) float32  -- constant-node log-prob row, as a column
    out_ref      : (2, TB) float32 -- node-major log-probs
    """
    K = table_t_ref.shape[0]
    TB = samples_ref.shape[1]

    samples = samples_ref[...]                              # (2, TB) int32
    i_idx = samples[1 - alpha:2 - alpha, :]                 # (1, TB) conditioning sample
    j_idx = samples[alpha:alpha + 1, :]                     # (1, TB) dependent-node sample

    iota_k = jax.lax.broadcasted_iota(jnp.int32, (K, TB), 0)
    onehot_i = (iota_k == i_idx).astype(jnp.float32)        # (K, TB)
    onehot_j = (iota_k == j_idx).astype(jnp.float32)        # (K, TB)

    # constant node: const_row[i_b]  (VPU mul + sublane reduce)
    out_const = jnp.sum(const_col_ref[...] * onehot_i, axis=0, keepdims=True)        # (1, TB)

    # dependent node: table[i_b, j_b] -- row select on MXU, column select on VPU/XLU
    rows = jnp.dot(table_t_ref[...], onehot_i, preferred_element_type=jnp.float32)   # (K, TB)
    out_dep = jnp.sum(rows * onehot_j, axis=0, keepdims=True)                        # (1, TB)

    if alpha == 1:        # node 0 constant, node 1 dependent
        out_ref[0:1, :] = out_const
        out_ref[1:2, :] = out_dep
    else:                 # node 0 dependent, node 1 constant
        out_ref[0:1, :] = out_dep
        out_ref[1:2, :] = out_const


def _make_tables(W0, b0, W1, b1, alpha):
    """Batch-independent precompute (plain JAX, runs once per parameter set)."""
    dep, cst = alpha, 1 - alpha
    h_dep = _leaky_relu(W0 + b0[1][None, :])                                   # (K, H)
    table = jax.nn.log_softmax(h_dep @ W1[dep] + b1[dep][None, :], axis=-1)    # (K, K)
    h_cst = _leaky_relu(b0[0])                                                 # (H,)
    const_row = jax.nn.log_softmax(h_cst @ W1[cst] + b1[cst])                  # (K,)
    return table.T, const_row.reshape(-1, 1)                                   # (K,K), (K,1)


def mlp_log_prob(samples, W0, b0, W1, b1, *, alpha=1, block_b=1024):
    """samples: (B, 2) int. Returns (B, 2) float32 log-probs (Categorical.log_prob)."""
    assert alpha in (0, 1)
    B = samples.shape[0]
    K = W0.shape[0]

    table_t, const_col = _make_tables(W0, b0, W1, b1, alpha)

    # Lane tile over batch: multiple of 128, capped at block_b, single tile if B small.
    TB = min(block_b, ((B + 127) // 128) * 128)
    TB = max(128, ((TB + 127) // 128) * 128)
    B_pad = ((B + TB - 1) // TB) * TB

    samples_t = jnp.transpose(samples.astype(jnp.int32))          # (2, B) node-major
    if B_pad != B:
        samples_t = jnp.pad(samples_t, ((0, 0), (0, B_pad - B)))  # pad with valid category 0

    out = pl.pallas_call(
        functools.partial(_mlp_logprob_kernel, alpha=alpha),
        out_shape=jax.ShapeDtypeStruct((2, B_pad), jnp.float32),
        grid_spec=pltpu.PrefetchScalarGridSpec(
            num_scalar_prefetch=0,
            grid=(B_pad // TB,),
            in_specs=[
                pl.BlockSpec((2, TB), lambda b: (0, b)),   # samples tile (batch on lanes)
                pl.BlockSpec((K, K), lambda b: (0, 0)),    # dep-node table (resident)
                pl.BlockSpec((K, 1), lambda b: (0, 0)),    # const-node row (resident)
            ],
            out_specs=pl.BlockSpec((2, TB), lambda b: (0, b)),
        ),
        compiler_params=pltpu.CompilerParams(
            dimension_semantics=("parallel",),   # batch tiles independent -> megacore on v7x
        ),
    )(samples_t, table_t, const_col)

    return jnp.transpose(out[:, :B])                              # (B, 2)


def _reference_log_prob(samples, W0, b0, W1, b1, alpha):
    """Pure-JAX reference mirroring the PyTorch forward."""
    B = samples.shape[0]
    H = W0.shape[1]
    hidden_0 = jnp.broadcast_to(b0[0], (B, H))
    hidden_1 = W0[samples[:, 1 - alpha]] + b0[1]
    hidden = jnp.stack([hidden_0, hidden_1] if alpha else [hidden_1, hidden_0], axis=1)
    hidden = _leaky_relu(hidden)
    logits = jnp.einsum('bij,ijk->bik', hidden, W1) + b1
    logp = jax.nn.log_softmax(logits, axis=-1)
    return jnp.take_along_axis(logp, samples[..., None], axis=-1)[..., 0]


if __name__ == "__main__":
    # Small shapes consistent with the module: num_categories=16, hidden=8, nodes=2.
    K = 16       # num_categories
    H = 8        # hidden_size
    B = 8        # batch

    key = jax.random.PRNGKey(0)
    k_w0, k_b0, k_w1, k_b1, k_s = jax.random.split(key, 5)

    # Deterministic param init mimicking kaiming_normal_ / uniform_(-1, 1).
    W0 = jax.random.normal(k_w0, (K, H), jnp.float32) * jnp.sqrt(2.0 / H)
    b0 = jax.random.uniform(k_b0, (2, H), jnp.float32, -1.0, 1.0)
    W1 = jax.random.normal(k_w1, (2, H, K), jnp.float32) * jnp.sqrt(2.0 / K)
    b1 = jax.random.uniform(k_b1, (2, K), jnp.float32, -1.0, 1.0)

    samples = jax.random.randint(k_s, (B, 2), 0, K, jnp.int32)

    for alpha in (1, 0):
        out = mlp_log_prob(samples, W0, b0, W1, b1, alpha=alpha)
        out = jax.block_until_ready(out)
        ref = _reference_log_prob(samples, W0, b0, W1, b1, alpha)
        assert out.shape == (B, 2)
        assert jnp.allclose(out, ref, atol=1e-5, rtol=1e-5), (alpha, out, ref)

    print("KERNEL_OK")
</pallas_src>

<mosaic_0001>
module attributes {stable_mosaic.version = 11 : i64} {
  func.func @_mlp_logprob_kernel(%arg0: i32, %arg1: memref<2x128xi32, #tpu.memory_space<vmem>>, %arg2: memref<16x16xf32, #tpu.memory_space<vmem>>, %arg3: memref<16x1xf32, #tpu.memory_space<vmem>>, %arg4: memref<2x128xf32, #tpu.memory_space<vmem>>) attributes {dimension_semantics = [#tpu.dimension_semantics<parallel>], iteration_bounds = array<i64: 1>, scalar_prefetch = 0 : i64, scratch_operands = 0 : i64, tpu.core_type = #tpu.core_type<tc>, window_params = [{transform_indices = @transform_0, window_bounds = array<i64: 2, 128>}, {pipeline_mode = #tpu.pipeline_mode<synchronous>, transform_indices = @transform_1, window_bounds = array<i64: 16, 16>}, {pipeline_mode = #tpu.pipeline_mode<synchronous>, transform_indices = @transform_2, window_bounds = array<i64: 16, 1>}, {transform_indices = @transform_3, window_bounds = array<i64: 2, 128>}]} {
    %c0 = arith.constant 0 : index
    %c0_0 = arith.constant 0 : index
    %0 = vector.load %arg1[%c0, %c0_0] : memref<2x128xi32, #tpu.memory_space<vmem>>, vector<2x128xi32>
    %1 = vector.extract_strided_slice %0 {offsets = [0, 0], sizes = [1, 128], strides = [1, 1]} : vector<2x128xi32> to vector<1x128xi32>
    %2 = vector.extract_strided_slice %0 {offsets = [1, 0], sizes = [1, 128], strides = [1, 1]} : vector<2x128xi32> to vector<1x128xi32>
    %3 = tpu.iota {dimensions = array<i32: 0>} : vector<16x128xi32>
    %4 = vector.broadcast %1 : vector<1x128xi32> to vector<16x128xi32>
    %5 = arith.cmpi eq, %3, %4 : vector<16x128xi32>
    %6 = arith.extui %5 : vector<16x128xi1> to vector<16x128xi32>
    %7 = arith.sitofp %6 : vector<16x128xi32> to vector<16x128xf32>
    %8 = vector.broadcast %2 : vector<1x128xi32> to vector<16x128xi32>
    %9 = arith.cmpi eq, %3, %8 : vector<16x128xi32>
    %10 = arith.extui %9 : vector<16x128xi1> to vector<16x128xi32>
    %11 = arith.sitofp %10 : vector<16x128xi32> to vector<16x128xf32>
    %c0_1 = arith.constant 0 : index
    %c0_2 = arith.constant 0 : index
    %12 = vector.load %arg3[%c0_1, %c0_2] : memref<16x1xf32, #tpu.memory_space<vmem>>, vector<16x1xf32>
    %13 = vector.broadcast %12 : vector<16x1xf32> to vector<16x128xf32>
    %14 = arith.mulf %13, %7 : vector<16x128xf32>
    %cst = arith.constant dense<0.000000e+00> : vector<128xf32>
    %15 = vector.multi_reduction <add>, %14, %cst [0] : vector<16x128xf32> to vector<128xf32>
    %16 = vector.shape_cast %15 : vector<128xf32> to vector<1x128xf32>
    %c0_3 = arith.constant 0 : index
    %c0_4 = arith.constant 0 : index
    %17 = vector.load %arg2[%c0_3, %c0_4] : memref<16x16xf32, #tpu.memory_space<vmem>>, vector<16x16xf32>
    %cst_5 = arith.constant dense<0.000000e+00> : vector<16x128xf32>
    %18 = tpu.matmul %17, %7, %cst_5 {dimension_numbers = #tpu.dot_dimension_numbers<[1], [0], [0], [1], [0, 0, 1, 1], [], []>} : vector<16x16xf32>, vector<16x128xf32>, vector<16x128xf32> -> vector<16x128xf32>
    %19 = arith.mulf %18, %11 : vector<16x128xf32>
    %cst_6 = arith.constant dense<0.000000e+00> : vector<128xf32>
    %20 = vector.multi_reduction <add>, %19, %cst_6 [0] : vector<16x128xf32> to vector<128xf32>
    %21 = vector.shape_cast %20 : vector<128xf32> to vector<1x128xf32>
    %c0_7 = arith.constant 0 : index
    %c0_8 = arith.constant 0 : index
    %22 = vector.load %arg4[%c0_7, %c0_8] : memref<2x128xf32, #tpu.memory_space<vmem>>, vector<1x128xf32>
    tpu.vector_store %arg4[%c0_7, %c0_8], %16 {strides = array<i32>} : memref<2x128xf32, #tpu.memory_space<vmem>>, vector<1x128xf32>,
    %c1 = arith.constant 1 : index
    %c0_9 = arith.constant 0 : index
    %23 = vector.load %arg4[%c1, %c0_9] : memref<2x128xf32, #tpu.memory_space<vmem>>, vector<1x128xf32>
    tpu.vector_store %arg4[%c1, %c0_9], %21 {strides = array<i32>} : memref<2x128xf32, #tpu.memory_space<vmem>>, vector<1x128xf32>,
    return
  }
  func.func @transform_0(%arg0: i32) -> (i32, i32) {
    %c0_i32 = arith.constant 0 : i32
    %c0_i32_0 = arith.constant 0 : i32
    return %c0_i32, %arg0 : i32, i32
  }
  func.func @transform_1(%arg0: i32) -> (i32, i32) {
    %c0_i32 = arith.constant 0 : i32
    %c0_i32_0 = arith.constant 0 : i32
    %c0_i32_1 = arith.constant 0 : i32
    return %c0_i32, %c0_i32_0 : i32, i32
  }
  func.func @transform_2(%arg0: i32) -> (i32, i32) {
    %c0_i32 = arith.constant 0 : i32
    %c0_i32_0 = arith.constant 0 : i32
    %c0_i32_1 = arith.constant 0 : i32
    return %c0_i32, %c0_i32_0 : i32, i32
  }
  func.func @transform_3(%arg0: i32) -> (i32, i32) {
    %c0_i32 = arith.constant 0 : i32
    %c0_i32_0 = arith.constant 0 : i32
    return %c0_i32, %arg0 : i32, i32
  }
}

</mosaic_0001>

<bundles_post_ra>
// kernel: tpu_custom_call.1
= control target key start
LH: loop header
LB: loop body
LE: loop exit
PB: predicated region body
PF: predicated region fallthrough
CT: control target
= control target key end

     0   :  { %v16_v0 = vlaneseq  ;;  %vm62_vm0 = vcmask 130048   ;;  %s260_s0 = inlined_call_operand.vmem [shape: s32[2,128], index: 0, kind: input, shape index: {}]   ;;  %s261_s1 = inlined_call_operand.vmem [shape: f32[16,16], index: 1, kind: input, shape index: {}]   ;;  %s262_s2 = inlined_call_operand.vmem [shape: f32[16,1], index: 2, kind: input, shape index: {}]   ;;  %s263_s3 = inlined_call_operand.hbm [shape: f32[2,128], index: 3, kind: output, shape index: {}]  }
   0x1   :  { %v60_v1 = vld [vmem:[%s261_s1] sm:$0xff] }
   0x2   :  { %185 = vmatprep.mubr.msk.f32.mxu0 %vm62_vm0, %v60_v1  ;;  %v39_v2 = vld [vmem:[%s262_s2] sm:$0xff] }
   0x3   :  { %8 = vsyncpa [#allocation3], 0  ;;  %v17_v3 = vshrl.u32 %v16_v0, 7  ;;  %v215_v4 = vmov 0   ;;  %v15_v5 = vld [vmem:[%s260_s0] sm:$0x3] }
   0x4   :  { %192 = vset.pattern.permute.xlu0 %v215_v4  ;;  %v40_v8 = vld [vmem:[%s262_s2 + $0x8] sm:$0xff]  ;;  %v216_v10 = vmov 1.0   ;;  %v217_v15 = vmov 0.0   ;;  %s218_s0 = smov [#allocation2]  }
   0x5   :  { %43 = vperm.xlu0 %192, %v39_v2   ;;  %v18_v6 = vadd.s32 8, %v17_v3  ;;  %v21_v7 = vsub.s32 0, %v17_v3  ;;  %v61_v11 = vld [vmem:[%s261_s1 + $0x8] sm:$0xff]  ;;  %v31_v12 = vsub.s32 1, %v17_v3  ;;  %s161_s1 = sshll.u32 %s218_s0, 4  ;;  %s162_s1 = int_to_ptr.vmem [resolvable:$true] %s161_s1 }
   0x6   :  { %s193_s2 = scalar_lea.vmem %s162_s1, 32  ;;  %p198_p1 = scmp.lt.s32.totalorder %s162_s1, %s162_s1 }
   0x7   :  { %v22_v9 = vrot.slane %v15_v5, %v21_v7  ;;  %v32_v13 = vrot.slane %v15_v5, %v31_v12  ;;  %p194_p0 = scmp.ne.s32.totalorder %s162_s1, %s193_s2  ;;  %p199_p2 = scmp.lt.s32.totalorder %s193_s2, %s193_s2 }
   0x9   :  { %48 = vperm.xlu0 %192, %v40_v8   ;;  %vm24_vm1 = vcmp.eq.s32.totalorder %v18_v6, %v22_v9  ;;  %vm23_vm2 = vcmp.eq.s32.totalorder %v17_v3, %v22_v9  ;;  %vm34_vm3 = vcmp.eq.s32.totalorder %v18_v6, %v32_v13  ;;  %vm33_vm4 = vcmp.eq.s32.totalorder %v17_v3, %v32_v13  ;;  %p200_p3 = por %p199_p2, %p198_p1 }
   0xa   :  { %181 = vmatprep.subr.msk.mxu0 %vm24_vm1, %v216_v10  ;;  %v169_v16 = vsel %vm23_vm2, 1.0, %v217_v15  ;;  %v170_v17 = vsel %vm24_vm1, 1.0, %v217_v15  ;;  %v172_v28 = vsel %vm34_vm3, 1.0, %v217_v15  ;;  %v171_v30 = vsel %vm33_vm4, 1.0, %v217_v15 }
   0xb   :  { %182 = vmatpush3.msk.msra.mxu0 %vm24_vm1, %v216_v10  ;;  %p201_p4 = pnand %p200_p3, %p194_p0 }
   0xc   :  { %183 = vmatprep.subr.msk.mxu0 %vm23_vm2, %v216_v10 }
   0xd   :  { %184 = vmatpush3.msk.msra.mxu0 %vm23_vm2, %v216_v10 }
   0xe   :  { %186 = vmatmul.mubr.msk.f32.vlgmr.msra.gmra.mxu0 %vm62_vm0, %v61_v11 }
  0x80   :  { %v44_v14 = vpop.permute.xlu0 %43 }
  0x81   :  { %v51_v18 = vmul.f32 %v169_v16, %v44_v14 }
  0x84   :  { %v49_v19 = vpop.permute.xlu0 %48 }
  0x85   :  { %v52_v20 = vmul.f32 %v170_v17, %v49_v19 }
  0x87   :  { %v53_v21 = vadd.f32 %v52_v20, %v51_v18 }
  0x89   :  { %v54_v22 = vrot.slane %v53_v21, 4 }
  0x8b   :  { %v55_v23 = vadd.f32 %v54_v22, %v53_v21 }
  0x8d   :  { %v56_v24 = vrot.slane %v55_v23, 2 }
  0x8f   :  { %v57_v25 = vadd.f32 %v56_v24, %v55_v23 }
  0x91   :  { %v58_v26 = vrot.slane %v57_v25, 1 }
  0x93   :  { %v59_v27 = vadd.f32 %v58_v26, %v57_v25 }
  0x95   :  { %153 = vst [vmem:[#allocation2] sm:$0x1] %v59_v27 }
  0xce   :  { %v187_v29 = vpop.f32.mrf.mxu0 }
  0xcf   :  { %v145_v32 = vmul.f32 %v187_v29, %v172_v28 }
  0xd0   :  { %v135_v31 = vpop.f32.mrf.mxu0 }
  0xd1   :  { %v144_v33 = vmul.f32 %v171_v30, %v135_v31 }
  0xd3   :  { %v146_v34 = vadd.f32 %v145_v32, %v144_v33 }
  0xd5   :  { %v147_v35 = vrot.slane %v146_v34, 4 }
  0xd7   :  { %v148_v36 = vadd.f32 %v147_v35, %v146_v34 }
  0xd9   :  { %v149_v37 = vrot.slane %v148_v36, 2 }
  0xdb   :  { %v150_v38 = vadd.f32 %v149_v37, %v148_v36 }
  0xdd   :  { %v151_v39 = vrot.slane %v150_v38, 1 }
  0xdf   :  { %v152_v40 = vadd.f32 %v151_v39, %v150_v38 }
  0xe1   :  { %154 = vst [vmem:[#allocation2 + $0x1] sm:$0x1] %v152_v40 }
  0xe2   :  { %204 = shalt.err (!%p201_p4)
}
  0xe3   :  { %164 = dma.vmem_to_hbm [thread:$0]  %s162_s1, 32, %s263_s3, [#allocation3]  }
  0xe4   :  { %213 = dma.done.wait [#allocation3], 32  }
  0xe5   :  { %214 = vsyncadd [#allocation3], 4294967264 }
  0xe6   :  { %168 = vsyncpa [#allocation3], 1 }

</bundles_post_ra>
